<compile_context>
chip_gen: v7x
topology: tpu7x:2x2x1
jax: 0.10.0
libtpu: 0.0.40
codegen_flags: <defaults>
</compile_context>

<pallas_src>
import jax
import jax.numpy as jnp
from jax.experimental import pallas as pl
from jax.experimental.pallas import tpu as pltpu

N_IN, N_HID, N_OUT = 4, 8, 3

R_SUB = 8          # sublane height of one compute slab
MAX_LANES = 512    # lane width of one slab (multiple of 128)
MAX_TILE_R = 64    # rows (of LANES elements) per grid step


def mlp_kernel(x_ref, w1_ref, b1_ref, w2_ref, b2_ref, o_ref):
    """One batch tile.

    x_ref : (N_IN,  TILE_R, LANES) f32 VMEM   -- batch on sublanes+lanes
    o_ref : (N_OUT, TILE_R, LANES) f32 VMEM
    w1_ref: (N_HID*N_IN,)  f32 SMEM, row-major [hid, in]   (PyTorch layout)
    b1_ref: (N_HID,)       f32 SMEM
    w2_ref: (N_OUT*N_HID,) f32 SMEM, row-major [out, hid]
    b2_ref: (N_OUT,)       f32 SMEM
    """
    tile_r = x_ref.shape[1]

    # Walk the tile in (R_SUB, LANES) fully dense sub-slabs to keep the live
    # working set (4 inputs + 1 hidden + 3 accumulators) inside the vreg file.
    for r0 in range(0, tile_r, R_SUB):
        xs = [x_ref[i, r0:r0 + R_SUB, :] for i in range(N_IN)]   # (R_SUB, LANES)

        accs = [None] * N_OUT
        for j in range(N_HID):
            # Hidden unit j: 4 scalar*slab FMAs + bias + ReLU (VPU).
            h = xs[0] * w1_ref[j * N_IN + 0]
            for i in range(1, N_IN):
                h = h + xs[i] * w1_ref[j * N_IN + i]
            h = jnp.maximum(h + b1_ref[j], 0.0)
            # Immediately fold its contribution into the 3 output accumulators
            # so h is dead right after (low register pressure).
            for k in range(N_OUT):
                t = h * w2_ref[k * N_HID + j]
                accs[k] = t if accs[k] is None else accs[k] + t

        for k in range(N_OUT):
            o_ref[k, r0:r0 + R_SUB, :] = (accs[k] + b2_ref[k]).astype(o_ref.dtype)


def _round_up(n, m):
    return (n + m - 1) // m * m


@jax.jit
def neural_diagnoser(x, w1, b1, w2, b2):
    """Forward pass of NeuralDiagnoser.

    x : [B, 4] float32
    w1: [8, 4], b1: [8], w2: [3, 8], b2: [3]   (PyTorch nn.Linear layouts)
    returns [B, 3] float32
    """
    B, n_in = x.shape
    assert n_in == N_IN

    # --- choose tiling (all static under jit) ---------------------------------
    bp = _round_up(max(B, 1), 128)                 # batch padded to lane width
    lanes = min(MAX_LANES, bp)                     # multiple of 128
    rows = (bp + lanes - 1) // lanes               # rows of `lanes` elements
    tile_r = min(MAX_TILE_R, _round_up(rows, R_SUB))
    rows = _round_up(rows, tile_r)
    padded_b = rows * lanes
    grid = (rows // tile_r,)

    # --- layout plumbing (outside the kernel): batch onto sublanes+lanes ------
    x_t = jnp.pad(x, ((0, padded_b - B), (0, 0))).T.reshape(N_IN, rows, lanes)

    smem_spec = pl.BlockSpec(memory_space=pltpu.MemorySpace.SMEM)

    out3 = pl.pallas_call(
        mlp_kernel,
        out_shape=jax.ShapeDtypeStruct((N_OUT, rows, lanes), x.dtype),
        grid=grid,
        in_specs=[
            pl.BlockSpec((N_IN, tile_r, lanes), lambda i: (0, i, 0)),  # batch tile
            smem_spec,   # w1 (resident across grid steps)
            smem_spec,   # b1
            smem_spec,   # w2
            smem_spec,   # b2
        ],
        out_specs=pl.BlockSpec((N_OUT, tile_r, lanes), lambda i: (0, i, 0)),
        compiler_params=pltpu.CompilerParams(
            dimension_semantics=("parallel",),     # shard batch over TCs (v7x)
        ),
    )(x_t, w1.reshape(-1), b1.reshape(-1), w2.reshape(-1), b2.reshape(-1))

    return out3.reshape(N_OUT, padded_b)[:, :B].T   # back to [B, 3]


def reference(x, w1, b1, w2, b2):
    """Plain-JAX reference (HIGHEST precision so it matches exact f32 VPU math)."""
    hp = jax.lax.Precision.HIGHEST
    h = jnp.maximum(jnp.dot(x, w1.T, precision=hp) + b1, 0.0)
    return jnp.dot(h, w2.T, precision=hp) + b2


def init_params(key):
    """Deterministic init mimicking nn.Linear default (uniform +/- 1/sqrt(fan_in))."""
    k1, k2, k3, k4 = jax.random.split(key, 4)
    bound1 = 1.0 / jnp.sqrt(4.0)
    bound2 = 1.0 / jnp.sqrt(8.0)
    w1 = jax.random.uniform(k1, (N_HID, N_IN), jnp.float32, -bound1, bound1)
    b1 = jax.random.uniform(k2, (N_HID,), jnp.float32, -bound1, bound1)
    w2 = jax.random.uniform(k3, (N_OUT, N_HID), jnp.float32, -bound2, bound2)
    b2 = jax.random.uniform(k4, (N_OUT,), jnp.float32, -bound2, bound2)
    return w1, b1, w2, b2


if __name__ == "__main__":
    key = jax.random.PRNGKey(0)
    kx, kp = jax.random.split(key)
    w1, b1, w2, b2 = init_params(kp)

    # Small demo batch (B=8, in_features=4).  At this size the fixed
    # pallas_call overhead dominates; the kernel is tiled/pipelined for large
    # batches (thousands of rows per call).
    x = jax.random.normal(kx, (8, N_IN), jnp.float32)
    out = jax.block_until_ready(neural_diagnoser(x, w1, b1, w2, b2))
    ref = reference(x, w1, b1, w2, b2)
    assert out.shape == (8, N_OUT), out.shape
    assert jnp.allclose(out, ref, atol=1e-5, rtol=1e-5), "mismatch vs reference (B=8)"

    # Batch not a multiple of the lane width -> exercises padding / slicing.
    x2 = jax.random.normal(jax.random.PRNGKey(1), (300, N_IN), jnp.float32)
    out2 = jax.block_until_ready(neural_diagnoser(x2, w1, b1, w2, b2))
    ref2 = reference(x2, w1, b1, w2, b2)
    assert out2.shape == (300, N_OUT), out2.shape
    assert jnp.allclose(out2, ref2, atol=1e-5, rtol=1e-5), "mismatch vs reference (B=300)"

    # Large batch -> exercises the multi-step, double-buffered grid and the
    # unrolled sub-slab loop inside a full (64, 512) tile.
    x3 = jax.random.normal(jax.random.PRNGKey(2), (70000, N_IN), jnp.float32)
    out3 = jax.block_until_ready(neural_diagnoser(x3, w1, b1, w2, b2))
    ref3 = reference(x3, w1, b1, w2, b2)
    assert out3.shape == (70000, N_OUT), out3.shape
    assert jnp.allclose(out3, ref3, atol=1e-5, rtol=1e-5), "mismatch vs reference (B=70000)"

    print("KERNEL_OK")
</pallas_src>

<mosaic_0001>
module attributes {stable_mosaic.version = 11 : i64} {
  func.func @mlp_kernel(%arg0: i32, %arg1: memref<4x8x128xf32, #tpu.memory_space<vmem>>, %arg2: memref<32xf32, #tpu.memory_space<smem>>, %arg3: memref<8xf32, #tpu.memory_space<smem>>, %arg4: memref<24xf32, #tpu.memory_space<smem>>, %arg5: memref<3xf32, #tpu.memory_space<smem>>, %arg6: memref<3x8x128xf32, #tpu.memory_space<vmem>>) attributes {dimension_semantics = [#tpu.dimension_semantics<parallel>], iteration_bounds = array<i64: 1>, scalar_prefetch = 0 : i64, scratch_operands = 0 : i64, tpu.core_type = #tpu.core_type<tc>, window_params = [{transform_indices = @transform_0, window_bounds = array<i64: 4, 8, 128>}, {transform_indices = @transform_1, window_bounds = array<i64: 32>}, {transform_indices = @transform_2, window_bounds = array<i64: 8>}, {transform_indices = @transform_3, window_bounds = array<i64: 24>}, {transform_indices = @transform_4, window_bounds = array<i64: 3>}, {transform_indices = @transform_5, window_bounds = array<i64: 3, 8, 128>}]} {
    %c0 = arith.constant 0 : index
    %c0_0 = arith.constant 0 : index
    %c0_1 = arith.constant 0 : index
    %0 = vector.load %arg1[%c0, %c0_0, %c0_1] : memref<4x8x128xf32, #tpu.memory_space<vmem>>, vector<1x8x128xf32>
    %1 = vector.shape_cast %0 : vector<1x8x128xf32> to vector<8x128xf32>
    %c1 = arith.constant 1 : index
    %c0_2 = arith.constant 0 : index
    %c0_3 = arith.constant 0 : index
    %2 = vector.load %arg1[%c1, %c0_2, %c0_3] : memref<4x8x128xf32, #tpu.memory_space<vmem>>, vector<1x8x128xf32>
    %3 = vector.shape_cast %2 : vector<1x8x128xf32> to vector<8x128xf32>
    %c2 = arith.constant 2 : index
    %c0_4 = arith.constant 0 : index
    %c0_5 = arith.constant 0 : index
    %4 = vector.load %arg1[%c2, %c0_4, %c0_5] : memref<4x8x128xf32, #tpu.memory_space<vmem>>, vector<1x8x128xf32>
    %5 = vector.shape_cast %4 : vector<1x8x128xf32> to vector<8x128xf32>
    %c3 = arith.constant 3 : index
    %c0_6 = arith.constant 0 : index
    %c0_7 = arith.constant 0 : index
    %6 = vector.load %arg1[%c3, %c0_6, %c0_7] : memref<4x8x128xf32, #tpu.memory_space<vmem>>, vector<1x8x128xf32>
    %7 = vector.shape_cast %6 : vector<1x8x128xf32> to vector<8x128xf32>
    %c0_8 = arith.constant 0 : index
    %8 = memref.load %arg2[%c0_8] : memref<32xf32, #tpu.memory_space<smem>>
    %9 = vector.broadcast %8 : f32 to vector<8x128xf32>
    %10 = arith.mulf %1, %9 : vector<8x128xf32>
    %c1_9 = arith.constant 1 : index
    %11 = memref.load %arg2[%c1_9] : memref<32xf32, #tpu.memory_space<smem>>
    %12 = vector.broadcast %11 : f32 to vector<8x128xf32>
    %13 = arith.mulf %3, %12 : vector<8x128xf32>
    %14 = arith.addf %10, %13 : vector<8x128xf32>
    %c2_10 = arith.constant 2 : index
    %15 = memref.load %arg2[%c2_10] : memref<32xf32, #tpu.memory_space<smem>>
    %16 = vector.broadcast %15 : f32 to vector<8x128xf32>
    %17 = arith.mulf %5, %16 : vector<8x128xf32>
    %18 = arith.addf %14, %17 : vector<8x128xf32>
    %c3_11 = arith.constant 3 : index
    %19 = memref.load %arg2[%c3_11] : memref<32xf32, #tpu.memory_space<smem>>
    %20 = vector.broadcast %19 : f32 to vector<8x128xf32>
    %21 = arith.mulf %7, %20 : vector<8x128xf32>
    %22 = arith.addf %18, %21 : vector<8x128xf32>
    %c0_12 = arith.constant 0 : index
    %23 = memref.load %arg3[%c0_12] : memref<8xf32, #tpu.memory_space<smem>>
    %24 = vector.broadcast %23 : f32 to vector<8x128xf32>
    %25 = arith.addf %22, %24 : vector<8x128xf32>
    %cst = arith.constant 0.000000e+00 : f32
    %26 = vector.broadcast %cst : f32 to vector<8x128xf32>
    %27 = arith.maximumf %25, %26 : vector<8x128xf32>
    %c0_13 = arith.constant 0 : index
    %28 = memref.load %arg4[%c0_13] : memref<24xf32, #tpu.memory_space<smem>>
    %29 = vector.broadcast %28 : f32 to vector<8x128xf32>
    %30 = arith.mulf %27, %29 : vector<8x128xf32>
    %c8 = arith.constant 8 : index
    %31 = memref.load %arg4[%c8] : memref<24xf32, #tpu.memory_space<smem>>
    %32 = vector.broadcast %31 : f32 to vector<8x128xf32>
    %33 = arith.mulf %27, %32 : vector<8x128xf32>
    %c16 = arith.constant 16 : index
    %34 = memref.load %arg4[%c16] : memref<24xf32, #tpu.memory_space<smem>>
    %35 = vector.broadcast %34 : f32 to vector<8x128xf32>
    %36 = arith.mulf %27, %35 : vector<8x128xf32>
    %c4 = arith.constant 4 : index
    %37 = memref.load %arg2[%c4] : memref<32xf32, #tpu.memory_space<smem>>
    %38 = vector.broadcast %37 : f32 to vector<8x128xf32>
    %39 = arith.mulf %1, %38 : vector<8x128xf32>
    %c5 = arith.constant 5 : index
    %40 = memref.load %arg2[%c5] : memref<32xf32, #tpu.memory_space<smem>>
    %41 = vector.broadcast %40 : f32 to vector<8x128xf32>
    %42 = arith.mulf %3, %41 : vector<8x128xf32>
    %43 = arith.addf %39, %42 : vector<8x128xf32>
    %c6 = arith.constant 6 : index
    %44 = memref.load %arg2[%c6] : memref<32xf32, #tpu.memory_space<smem>>
    %45 = vector.broadcast %44 : f32 to vector<8x128xf32>
    %46 = arith.mulf %5, %45 : vector<8x128xf32>
    %47 = arith.addf %43, %46 : vector<8x128xf32>
    %c7 = arith.constant 7 : index
    %48 = memref.load %arg2[%c7] : memref<32xf32, #tpu.memory_space<smem>>
    %49 = vector.broadcast %48 : f32 to vector<8x128xf32>
    %50 = arith.mulf %7, %49 : vector<8x128xf32>
    %51 = arith.addf %47, %50 : vector<8x128xf32>
    %c1_14 = arith.constant 1 : index
    %52 = memref.load %arg3[%c1_14] : memref<8xf32, #tpu.memory_space<smem>>
    %53 = vector.broadcast %52 : f32 to vector<8x128xf32>
    %54 = arith.addf %51, %53 : vector<8x128xf32>
    %cst_15 = arith.constant 0.000000e+00 : f32
    %55 = vector.broadcast %cst_15 : f32 to vector<8x128xf32>
    %56 = arith.maximumf %54, %55 : vector<8x128xf32>
    %c1_16 = arith.constant 1 : index
    %57 = memref.load %arg4[%c1_16] : memref<24xf32, #tpu.memory_space<smem>>
    %58 = vector.broadcast %57 : f32 to vector<8x128xf32>
    %59 = arith.mulf %56, %58 : vector<8x128xf32>
    %60 = arith.addf %30, %59 : vector<8x128xf32>
    %c9 = arith.constant 9 : index
    %61 = memref.load %arg4[%c9] : memref<24xf32, #tpu.memory_space<smem>>
    %62 = vector.broadcast %61 : f32 to vector<8x128xf32>
    %63 = arith.mulf %56, %62 : vector<8x128xf32>
    %64 = arith.addf %33, %63 : vector<8x128xf32>
    %c17 = arith.constant 17 : index
    %65 = memref.load %arg4[%c17] : memref<24xf32, #tpu.memory_space<smem>>
    %66 = vector.broadcast %65 : f32 to vector<8x128xf32>
    %67 = arith.mulf %56, %66 : vector<8x128xf32>
    %68 = arith.addf %36, %67 : vector<8x128xf32>
    %c8_17 = arith.constant 8 : index
    %69 = memref.load %arg2[%c8_17] : memref<32xf32, #tpu.memory_space<smem>>
    %70 = vector.broadcast %69 : f32 to vector<8x128xf32>
    %71 = arith.mulf %1, %70 : vector<8x128xf32>
    %c9_18 = arith.constant 9 : index
    %72 = memref.load %arg2[%c9_18] : memref<32xf32, #tpu.memory_space<smem>>
    %73 = vector.broadcast %72 : f32 to vector<8x128xf32>
    %74 = arith.mulf %3, %73 : vector<8x128xf32>
    %75 = arith.addf %71, %74 : vector<8x128xf32>
    %c10 = arith.constant 10 : index
    %76 = memref.load %arg2[%c10] : memref<32xf32, #tpu.memory_space<smem>>
    %77 = vector.broadcast %76 : f32 to vector<8x128xf32>
    %78 = arith.mulf %5, %77 : vector<8x128xf32>
    %79 = arith.addf %75, %78 : vector<8x128xf32>
    %c11 = arith.constant 11 : index
    %80 = memref.load %arg2[%c11] : memref<32xf32, #tpu.memory_space<smem>>
    %81 = vector.broadcast %80 : f32 to vector<8x128xf32>
    %82 = arith.mulf %7, %81 : vector<8x128xf32>
    %83 = arith.addf %79, %82 : vector<8x128xf32>
    %c2_19 = arith.constant 2 : index
    %84 = memref.load %arg3[%c2_19] : memref<8xf32, #tpu.memory_space<smem>>
    %85 = vector.broadcast %84 : f32 to vector<8x128xf32>
    %86 = arith.addf %83, %85 : vector<8x128xf32>
    %cst_20 = arith.constant 0.000000e+00 : f32
    %87 = vector.broadcast %cst_20 : f32 to vector<8x128xf32>
    %88 = arith.maximumf %86, %87 : vector<8x128xf32>
    %c2_21 = arith.constant 2 : index
    %89 = memref.load %arg4[%c2_21] : memref<24xf32, #tpu.memory_space<smem>>
    %90 = vector.broadcast %89 : f32 to vector<8x128xf32>
    %91 = arith.mulf %88, %90 : vector<8x128xf32>
    %92 = arith.addf %60, %91 : vector<8x128xf32>
    %c10_22 = arith.constant 10 : index
    %93 = memref.load %arg4[%c10_22] : memref<24xf32, #tpu.memory_space<smem>>
    %94 = vector.broadcast %93 : f32 to vector<8x128xf32>
    %95 = arith.mulf %88, %94 : vector<8x128xf32>
    %96 = arith.addf %64, %95 : vector<8x128xf32>
    %c18 = arith.constant 18 : index
    %97 = memref.load %arg4[%c18] : memref<24xf32, #tpu.memory_space<smem>>
    %98 = vector.broadcast %97 : f32 to vector<8x128xf32>
    %99 = arith.mulf %88, %98 : vector<8x128xf32>
    %100 = arith.addf %68, %99 : vector<8x128xf32>
    %c12 = arith.constant 12 : index
    %101 = memref.load %arg2[%c12] : memref<32xf32, #tpu.memory_space<smem>>
    %102 = vector.broadcast %101 : f32 to vector<8x128xf32>
    %103 = arith.mulf %1, %102 : vector<8x128xf32>
    %c13 = arith.constant 13 : index
    %104 = memref.load %arg2[%c13] : memref<32xf32, #tpu.memory_space<smem>>
    %105 = vector.broadcast %104 : f32 to vector<8x128xf32>
    %106 = arith.mulf %3, %105 : vector<8x128xf32>
    %107 = arith.addf %103, %106 : vector<8x128xf32>
    %c14 = arith.constant 14 : index
    %108 = memref.load %arg2[%c14] : memref<32xf32, #tpu.memory_space<smem>>
    %109 = vector.broadcast %108 : f32 to vector<8x128xf32>
    %110 = arith.mulf %5, %109 : vector<8x128xf32>
    %111 = arith.addf %107, %110 : vector<8x128xf32>
    %c15 = arith.constant 15 : index
    %112 = memref.load %arg2[%c15] : memref<32xf32, #tpu.memory_space<smem>>
    %113 = vector.broadcast %112 : f32 to vector<8x128xf32>
    %114 = arith.mulf %7, %113 : vector<8x128xf32>
    %115 = arith.addf %111, %114 : vector<8x128xf32>
    %c3_23 = arith.constant 3 : index
    %116 = memref.load %arg3[%c3_23] : memref<8xf32, #tpu.memory_space<smem>>
    %117 = vector.broadcast %116 : f32 to vector<8x128xf32>
    %118 = arith.addf %115, %117 : vector<8x128xf32>
    %cst_24 = arith.constant 0.000000e+00 : f32
    %119 = vector.broadcast %cst_24 : f32 to vector<8x128xf32>
    %120 = arith.maximumf %118, %119 : vector<8x128xf32>
    %c3_25 = arith.constant 3 : index
    %121 = memref.load %arg4[%c3_25] : memref<24xf32, #tpu.memory_space<smem>>
    %122 = vector.broadcast %121 : f32 to vector<8x128xf32>
    %123 = arith.mulf %120, %122 : vector<8x128xf32>
    %124 = arith.addf %92, %123 : vector<8x128xf32>
    %c11_26 = arith.constant 11 : index
    %125 = memref.load %arg4[%c11_26] : memref<24xf32, #tpu.memory_space<smem>>
    %126 = vector.broadcast %125 : f32 to vector<8x128xf32>
    %127 = arith.mulf %120, %126 : vector<8x128xf32>
    %128 = arith.addf %96, %127 : vector<8x128xf32>
    %c19 = arith.constant 19 : index
    %129 = memref.load %arg4[%c19] : memref<24xf32, #tpu.memory_space<smem>>
    %130 = vector.broadcast %129 : f32 to vector<8x128xf32>
    %131 = arith.mulf %120, %130 : vector<8x128xf32>
    %132 = arith.addf %100, %131 : vector<8x128xf32>
    %c16_27 = arith.constant 16 : index
    %133 = memref.load %arg2[%c16_27] : memref<32xf32, #tpu.memory_space<smem>>
    %134 = vector.broadcast %133 : f32 to vector<8x128xf32>
    %135 = arith.mulf %1, %134 : vector<8x128xf32>
    %c17_28 = arith.constant 17 : index
    %136 = memref.load %arg2[%c17_28] : memref<32xf32, #tpu.memory_space<smem>>
    %137 = vector.broadcast %136 : f32 to vector<8x128xf32>
    %138 = arith.mulf %3, %137 : vector<8x128xf32>
    %139 = arith.addf %135, %138 : vector<8x128xf32>
    %c18_29 = arith.constant 18 : index
    %140 = memref.load %arg2[%c18_29] : memref<32xf32, #tpu.memory_space<smem>>
    %141 = vector.broadcast %140 : f32 to vector<8x128xf32>
    %142 = arith.mulf %5, %141 : vector<8x128xf32>
    %143 = arith.addf %139, %142 : vector<8x128xf32>
    %c19_30 = arith.constant 19 : index
    %144 = memref.load %arg2[%c19_30] : memref<32xf32, #tpu.memory_space<smem>>
    %145 = vector.broadcast %144 : f32 to vector<8x128xf32>
    %146 = arith.mulf %7, %145 : vector<8x128xf32>
    %147 = arith.addf %143, %146 : vector<8x128xf32>
    %c4_31 = arith.constant 4 : index
    %148 = memref.load %arg3[%c4_31] : memref<8xf32, #tpu.memory_space<smem>>
    %149 = vector.broadcast %148 : f32 to vector<8x128xf32>
    %150 = arith.addf %147, %149 : vector<8x128xf32>
    %cst_32 = arith.constant 0.000000e+00 : f32
    %151 = vector.broadcast %cst_32 : f32 to vector<8x128xf32>
    %152 = arith.maximumf %150, %151 : vector<8x128xf32>
    %c4_33 = arith.constant 4 : index
    %153 = memref.load %arg4[%c4_33] : memref<24xf32, #tpu.memory_space<smem>>
    %154 = vector.broadcast %153 : f32 to vector<8x128xf32>
    %155 = arith.mulf %152, %154 : vector<8x128xf32>
    %156 = arith.addf %124, %155 : vector<8x128xf32>
    %c12_34 = arith.constant 12 : index
    %157 = memref.load %arg4[%c12_34] : memref<24xf32, #tpu.memory_space<smem>>
    %158 = vector.broadcast %157 : f32 to vector<8x128xf32>
    %159 = arith.mulf %152, %158 : vector<8x128xf32>
    %160 = arith.addf %128, %159 : vector<8x128xf32>
    %c20 = arith.constant 20 : index
    %161 = memref.load %arg4[%c20] : memref<24xf32, #tpu.memory_space<smem>>
    %162 = vector.broadcast %161 : f32 to vector<8x128xf32>
    %163 = arith.mulf %152, %162 : vector<8x128xf32>
    %164 = arith.addf %132, %163 : vector<8x128xf32>
    %c20_35 = arith.constant 20 : index
    %165 = memref.load %arg2[%c20_35] : memref<32xf32, #tpu.memory_space<smem>>
    %166 = vector.broadcast %165 : f32 to vector<8x128xf32>
    %167 = arith.mulf %1, %166 : vector<8x128xf32>
    %c21 = arith.constant 21 : index
    %168 = memref.load %arg2[%c21] : memref<32xf32, #tpu.memory_space<smem>>
    %169 = vector.broadcast %168 : f32 to vector<8x128xf32>
    %170 = arith.mulf %3, %169 : vector<8x128xf32>
    %171 = arith.addf %167, %170 : vector<8x128xf32>
    %c22 = arith.constant 22 : index
    %172 = memref.load %arg2[%c22] : memref<32xf32, #tpu.memory_space<smem>>
    %173 = vector.broadcast %172 : f32 to vector<8x128xf32>
    %174 = arith.mulf %5, %173 : vector<8x128xf32>
    %175 = arith.addf %171, %174 : vector<8x128xf32>
    %c23 = arith.constant 23 : index
    %176 = memref.load %arg2[%c23] : memref<32xf32, #tpu.memory_space<smem>>
    %177 = vector.broadcast %176 : f32 to vector<8x128xf32>
    %178 = arith.mulf %7, %177 : vector<8x128xf32>
    %179 = arith.addf %175, %178 : vector<8x128xf32>
    %c5_36 = arith.constant 5 : index
    %180 = memref.load %arg3[%c5_36] : memref<8xf32, #tpu.memory_space<smem>>
    %181 = vector.broadcast %180 : f32 to vector<8x128xf32>
    %182 = arith.addf %179, %181 : vector<8x128xf32>
    %cst_37 = arith.constant 0.000000e+00 : f32
    %183 = vector.broadcast %cst_37 : f32 to vector<8x128xf32>
    %184 = arith.maximumf %182, %183 : vector<8x128xf32>
    %c5_38 = arith.constant 5 : index
    %185 = memref.load %arg4[%c5_38] : memref<24xf32, #tpu.memory_space<smem>>
    %186 = vector.broadcast %185 : f32 to vector<8x128xf32>
    %187 = arith.mulf %184, %186 : vector<8x128xf32>
    %188 = arith.addf %156, %187 : vector<8x128xf32>
    %c13_39 = arith.constant 13 : index
    %189 = memref.load %arg4[%c13_39] : memref<24xf32, #tpu.memory_space<smem>>
    %190 = vector.broadcast %189 : f32 to vector<8x128xf32>
    %191 = arith.mulf %184, %190 : vector<8x128xf32>
    %192 = arith.addf %160, %191 : vector<8x128xf32>
    %c21_40 = arith.constant 21 : index
    %193 = memref.load %arg4[%c21_40] : memref<24xf32, #tpu.memory_space<smem>>
    %194 = vector.broadcast %193 : f32 to vector<8x128xf32>
    %195 = arith.mulf %184, %194 : vector<8x128xf32>
    %196 = arith.addf %164, %195 : vector<8x128xf32>
    %c24 = arith.constant 24 : index
    %197 = memref.load %arg2[%c24] : memref<32xf32, #tpu.memory_space<smem>>
    %198 = vector.broadcast %197 : f32 to vector<8x128xf32>
    %199 = arith.mulf %1, %198 : vector<8x128xf32>
    %c25 = arith.constant 25 : index
    %200 = memref.load %arg2[%c25] : memref<32xf32, #tpu.memory_space<smem>>
    %201 = vector.broadcast %200 : f32 to vector<8x128xf32>
    %202 = arith.mulf %3, %201 : vector<8x128xf32>
    %203 = arith.addf %199, %202 : vector<8x128xf32>
    %c26 = arith.constant 26 : index
    %204 = memref.load %arg2[%c26] : memref<32xf32, #tpu.memory_space<smem>>
    %205 = vector.broadcast %204 : f32 to vector<8x128xf32>
    %206 = arith.mulf %5, %205 : vector<8x128xf32>
    %207 = arith.addf %203, %206 : vector<8x128xf32>
    %c27 = arith.constant 27 : index
    %208 = memref.load %arg2[%c27] : memref<32xf32, #tpu.memory_space<smem>>
    %209 = vector.broadcast %208 : f32 to vector<8x128xf32>
    %210 = arith.mulf %7, %209 : vector<8x128xf32>
    %211 = arith.addf %207, %210 : vector<8x128xf32>
    %c6_41 = arith.constant 6 : index
    %212 = memref.load %arg3[%c6_41] : memref<8xf32, #tpu.memory_space<smem>>
    %213 = vector.broadcast %212 : f32 to vector<8x128xf32>
    %214 = arith.addf %211, %213 : vector<8x128xf32>
    %cst_42 = arith.constant 0.000000e+00 : f32
    %215 = vector.broadcast %cst_42 : f32 to vector<8x128xf32>
    %216 = arith.maximumf %214, %215 : vector<8x128xf32>
    %c6_43 = arith.constant 6 : index
    %217 = memref.load %arg4[%c6_43] : memref<24xf32, #tpu.memory_space<smem>>
    %218 = vector.broadcast %217 : f32 to vector<8x128xf32>
    %219 = arith.mulf %216, %218 : vector<8x128xf32>
    %220 = arith.addf %188, %219 : vector<8x128xf32>
    %c14_44 = arith.constant 14 : index
    %221 = memref.load %arg4[%c14_44] : memref<24xf32, #tpu.memory_space<smem>>
    %222 = vector.broadcast %221 : f32 to vector<8x128xf32>
    %223 = arith.mulf %216, %222 : vector<8x128xf32>
    %224 = arith.addf %192, %223 : vector<8x128xf32>
    %c22_45 = arith.constant 22 : index
    %225 = memref.load %arg4[%c22_45] : memref<24xf32, #tpu.memory_space<smem>>
    %226 = vector.broadcast %225 : f32 to vector<8x128xf32>
    %227 = arith.mulf %216, %226 : vector<8x128xf32>
    %228 = arith.addf %196, %227 : vector<8x128xf32>
    %c28 = arith.constant 28 : index
    %229 = memref.load %arg2[%c28] : memref<32xf32, #tpu.memory_space<smem>>
    %230 = vector.broadcast %229 : f32 to vector<8x128xf32>
    %231 = arith.mulf %1, %230 : vector<8x128xf32>
    %c29 = arith.constant 29 : index
    %232 = memref.load %arg2[%c29] : memref<32xf32, #tpu.memory_space<smem>>
    %233 = vector.broadcast %232 : f32 to vector<8x128xf32>
    %234 = arith.mulf %3, %233 : vector<8x128xf32>
    %235 = arith.addf %231, %234 : vector<8x128xf32>
    %c30 = arith.constant 30 : index
    %236 = memref.load %arg2[%c30] : memref<32xf32, #tpu.memory_space<smem>>
    %237 = vector.broadcast %236 : f32 to vector<8x128xf32>
    %238 = arith.mulf %5, %237 : vector<8x128xf32>
    %239 = arith.addf %235, %238 : vector<8x128xf32>
    %c31 = arith.constant 31 : index
    %240 = memref.load %arg2[%c31] : memref<32xf32, #tpu.memory_space<smem>>
    %241 = vector.broadcast %240 : f32 to vector<8x128xf32>
    %242 = arith.mulf %7, %241 : vector<8x128xf32>
    %243 = arith.addf %239, %242 : vector<8x128xf32>
    %c7_46 = arith.constant 7 : index
    %244 = memref.load %arg3[%c7_46] : memref<8xf32, #tpu.memory_space<smem>>
    %245 = vector.broadcast %244 : f32 to vector<8x128xf32>
    %246 = arith.addf %243, %245 : vector<8x128xf32>
    %cst_47 = arith.constant 0.000000e+00 : f32
    %247 = vector.broadcast %cst_47 : f32 to vector<8x128xf32>
    %248 = arith.maximumf %246, %247 : vector<8x128xf32>
    %c7_48 = arith.constant 7 : index
    %249 = memref.load %arg4[%c7_48] : memref<24xf32, #tpu.memory_space<smem>>
    %250 = vector.broadcast %249 : f32 to vector<8x128xf32>
    %251 = arith.mulf %248, %250 : vector<8x128xf32>
    %252 = arith.addf %220, %251 : vector<8x128xf32>
    %c15_49 = arith.constant 15 : index
    %253 = memref.load %arg4[%c15_49] : memref<24xf32, #tpu.memory_space<smem>>
    %254 = vector.broadcast %253 : f32 to vector<8x128xf32>
    %255 = arith.mulf %248, %254 : vector<8x128xf32>
    %256 = arith.addf %224, %255 : vector<8x128xf32>
    %c23_50 = arith.constant 23 : index
    %257 = memref.load %arg4[%c23_50] : memref<24xf32, #tpu.memory_space<smem>>
    %258 = vector.broadcast %257 : f32 to vector<8x128xf32>
    %259 = arith.mulf %248, %258 : vector<8x128xf32>
    %260 = arith.addf %228, %259 : vector<8x128xf32>
    %c0_51 = arith.constant 0 : index
    %261 = memref.load %arg5[%c0_51] : memref<3xf32, #tpu.memory_space<smem>>
    %262 = vector.broadcast %261 : f32 to vector<8x128xf32>
    %263 = arith.addf %252, %262 : vector<8x128xf32>
    %c0_52 = arith.constant 0 : index
    %c0_53 = arith.constant 0 : index
    %c0_54 = arith.constant 0 : index
    %264 = vector.load %arg6[%c0_52, %c0_53, %c0_54] : memref<3x8x128xf32, #tpu.memory_space<vmem>>, vector<1x8x128xf32>
    %265 = vector.shape_cast %264 : vector<1x8x128xf32> to vector<8x128xf32>
    %266 = vector.shape_cast %263 : vector<8x128xf32> to vector<1x8x128xf32>
    tpu.vector_store %arg6[%c0_52, %c0_53, %c0_54], %266 {strides = array<i32>} : memref<3x8x128xf32, #tpu.memory_space<vmem>>, vector<1x8x128xf32>,
    %c1_55 = arith.constant 1 : index
    %267 = memref.load %arg5[%c1_55] : memref<3xf32, #tpu.memory_space<smem>>
    %268 = vector.broadcast %267 : f32 to vector<8x128xf32>
    %269 = arith.addf %256, %268 : vector<8x128xf32>
    %c1_56 = arith.constant 1 : index
    %c0_57 = arith.constant 0 : index
    %c0_58 = arith.constant 0 : index
    %270 = vector.load %arg6[%c1_56, %c0_57, %c0_58] : memref<3x8x128xf32, #tpu.memory_space<vmem>>, vector<1x8x128xf32>
    %271 = vector.shape_cast %270 : vector<1x8x128xf32> to vector<8x128xf32>
    %272 = vector.shape_cast %269 : vector<8x128xf32> to vector<1x8x128xf32>
    tpu.vector_store %arg6[%c1_56, %c0_57, %c0_58], %272 {strides = array<i32>} : memref<3x8x128xf32, #tpu.memory_space<vmem>>, vector<1x8x128xf32>,
    %c2_59 = arith.constant 2 : index
    %273 = memref.load %arg5[%c2_59] : memref<3xf32, #tpu.memory_space<smem>>
    %274 = vector.broadcast %273 : f32 to vector<8x128xf32>
    %275 = arith.addf %260, %274 : vector<8x128xf32>
    %c2_60 = arith.constant 2 : index
    %c0_61 = arith.constant 0 : index
    %c0_62 = arith.constant 0 : index
    %276 = vector.load %arg6[%c2_60, %c0_61, %c0_62] : memref<3x8x128xf32, #tpu.memory_space<vmem>>, vector<1x8x128xf32>
    %277 = vector.shape_cast %276 : vector<1x8x128xf32> to vector<8x128xf32>
    %278 = vector.shape_cast %275 : vector<8x128xf32> to vector<1x8x128xf32>
    tpu.vector_store %arg6[%c2_60, %c0_61, %c0_62], %278 {strides = array<i32>} : memref<3x8x128xf32, #tpu.memory_space<vmem>>, vector<1x8x128xf32>,
    return
  }
  func.func @transform_0(%arg0: i32) -> (i32, i32, i32) {
    %c0_i32 = arith.constant 0 : i32
    %c0_i32_0 = arith.constant 0 : i32
    %c0_i32_1 = arith.constant 0 : i32
    return %c0_i32, %arg0, %c0_i32_0 : i32, i32, i32
  }
  func.func @transform_1(%arg0: i32) -> i32 {
    %c0_i32 = arith.constant 0 : i32
    %c0_i32_0 = arith.constant 0 : i32
    return %c0_i32 : i32
  }
  func.func @transform_2(%arg0: i32) -> i32 {
    %c0_i32 = arith.constant 0 : i32
    %c0_i32_0 = arith.constant 0 : i32
    return %c0_i32 : i32
  }
  func.func @transform_3(%arg0: i32) -> i32 {
    %c0_i32 = arith.constant 0 : i32
    %c0_i32_0 = arith.constant 0 : i32
    return %c0_i32 : i32
  }
  func.func @transform_4(%arg0: i32) -> i32 {
    %c0_i32 = arith.constant 0 : i32
    %c0_i32_0 = arith.constant 0 : i32
    return %c0_i32 : i32
  }
  func.func @transform_5(%arg0: i32) -> (i32, i32, i32) {
    %c0_i32 = arith.constant 0 : i32
    %c0_i32_0 = arith.constant 0 : i32
    %c0_i32_1 = arith.constant 0 : i32
    return %c0_i32, %arg0, %c0_i32_0 : i32, i32, i32
  }
}

</mosaic_0001>

<bundles_post_ra>
// kernel: neural_diagnoser.1
= control target key start
LH: loop header
LB: loop body
LE: loop exit
PB: predicated region body
PF: predicated region fallthrough
CT: control target
= control target key end

     0   :  { %10 = vsyncpa [#allocation3], 0  ;;  %s745_s0 = inlined_call_operand.vmem [shape: f32[4,8,128], index: 0, kind: input, shape index: {}]   ;;  %s746_s1 = inlined_call_operand.vmem [shape: f32[32], index: 1, kind: input, shape index: {}]   ;;  %s747_s2 = inlined_call_operand.vmem [shape: f32[8], index: 2, kind: input, shape index: {}]   ;;  %s748_s3 = inlined_call_operand.vmem [shape: f32[24], index: 3, kind: input, shape index: {}]   ;;  %s749_s4 = inlined_call_operand.vmem [shape: f32[3], index: 4, kind: input, shape index: {}]   ;;  %s750_s5 = inlined_call_operand.vmem [shape: f32[3,8,128], index: 5, kind: output, shape index: {}]  }
   0x1   :  { %11 = vsyncpa [#allocation5], 0  ;;  %s31_s20 = sshll.u32 %s747_s2, 4  ;;  %s32_s20 = int_to_ptr.vmem [resolvable:$true] %s31_s20 }
   0x2   :  { %12 = vsyncpa [#allocation8], 0  ;;  %s21_s23 = sshll.u32 %s746_s1, 4  ;;  %s413_s24 = scalar_lea.vmem %s32_s20, 16  ;;  %s22_s23 = int_to_ptr.vmem [resolvable:$true] %s21_s23 }
   0x3   :  { %p414_p0 = scmp.ne.s32.totalorder %s32_s20, %s413_s24  ;;  %p418_p1 = scmp.lt.s32.totalorder %s32_s20, %s32_s20 }
   0x4   :  { %p419_p2 = scmp.lt.s32.totalorder %s413_s24, %s413_s24 }
   0x6   :  { %p420_p3 = por %p419_p2, %p418_p1 }
   0x8   :  { %p421_p4 = pnand %p420_p3, %p414_p0 }
   0xa   :  { %424 = shalt.err (!%p421_p4)
}
   0xb   :  { %s467_s25 = smov [#allocation4]   ;;  %s425_s26 = scalar_lea.vmem %s22_s23, 16 }
   0xc   :  { %34 = dma.vmem_to_smem %s32_s20, 16, %s467_s25, [#allocation5]  }
   0xd   :  { %p426_p5 = scmp.ne.s32.totalorder %s22_s23, %s425_s26  ;;  %p430_p6 = scmp.lt.s32.totalorder %s22_s23, %s22_s23 }
   0xe   :  { %p431_p7 = scmp.lt.s32.totalorder %s425_s26, %s425_s26 }
  0x10   :  { %p432_p8 = por %p431_p7, %p430_p6 }
  0x12   :  { %p433_p9 = pnand %p432_p8, %p426_p5 }
  0x14   :  { %436 = shalt.err (!%p433_p9)
}
  0x15   :  { %s468_s2 = smov [#allocation2]   ;;  %s41_s28 = sshll.u32 %s748_s3, 4  ;;  %s42_s28 = int_to_ptr.vmem [resolvable:$true] %s41_s28 }
  0x16   :  { %24 = dma.vmem_to_smem %s22_s23, 16, %s468_s2, [#allocation3]  }
  0x17   :  { %s51_s6 = sshll.u32 %s749_s4, 4  ;;  %s437_s7 = scalar_lea.vmem %s42_s28, 16  ;;  %s52_s6 = int_to_ptr.vmem [resolvable:$true] %s51_s6 }
  0x18   :  { %p438_p10 = scmp.ne.s32.totalorder %s42_s28, %s437_s7  ;;  %p442_p11 = scmp.lt.s32.totalorder %s42_s28, %s42_s28 }
  0x19   :  { %p443_p12 = scmp.lt.s32.totalorder %s437_s7, %s437_s7 }
  0x1b   :  { %p444_p13 = por %p443_p12, %p442_p11 }
  0x1d   :  { %p445_p0 = pnand %p444_p13, %p438_p10 }
  0x1f   :  { %448 = shalt.err (!%p445_p0)
}
  0x20   :  { %s469_s8 = smov [#allocation6]   ;;  %s449_s9 = scalar_lea.vmem %s52_s6, 16 }
  0x21   :  { %44 = dma.vmem_to_smem %s42_s28, 16, %s469_s8, [#allocation5]  }
  0x22   :  { %p450_p1 = scmp.ne.s32.totalorder %s52_s6, %s449_s9  ;;  %p454_p2 = scmp.lt.s32.totalorder %s52_s6, %s52_s6 }
  0x23   :  { %p455_p3 = scmp.lt.s32.totalorder %s449_s9, %s449_s9 }
  0x25   :  { %p456_p4 = por %p455_p3, %p454_p2 }
  0x27   :  { %p457_p5 = pnand %p456_p4, %p450_p1 }
  0x29   :  { %460 = shalt.err (!%p457_p5)
}
  0x2a   :  { %s470_s3 = smov [#allocation7]  }
  0x2b   :  { %54 = dma.vmem_to_smem %s52_s6, 16, %s470_s3, [#allocation8]  }
  0x2c   :  { %461 = dma.done.wait [#allocation3], 16  }
  0x2d   :  { %462 = vsyncadd [#allocation3], 4294967280 }
  0x2e   :  { %463 = dma.done.wait [#allocation5], 32  }
  0x2f   :  { %464 = vsyncadd [#allocation5], 4294967264 }
  0x30   :  { %465 = dma.done.wait [#allocation8], 16  }
  0x31   :  { %466 = vsyncadd [#allocation8], 4294967280 }
  0x32   :  { %67 = sfence }
  0x33   :  { %s75_s4 = sld [smem:[#allocation2]]  ;;  %s344_s10 = sld [smem:[#allocation2 + $0x1]]  ;;  %v522_v0 = vld [vmem:[%s745_s0] sm:$0xff]  ;;  %v529_v1 = vld [vmem:[%s745_s0 + $0x8] sm:$0xff]  ;;  %v534_v2 = vld [vmem:[%s745_s0 + $0x10] sm:$0xff] }
  0x34   :  { %s345_s11 = sld [smem:[#allocation2 + $0x2]]  ;;  %s346_s12 = sld [smem:[#allocation2 + $0x3]]  ;;  %v543_v4 = vld [vmem:[%s745_s0 + $0x18] sm:$0xff] }
  0x35   :  { %s513_s13 = sld [smem:[#allocation4]]  ;;  %s349_s19 = sld [smem:[#allocation2 + $0x4]] }
  0x36   :  { %s515_s14 = sld [smem:[#allocation6]]  ;;  %s350_s24 = sld [smem:[#allocation2 + $0x5]] }
  0x37   :  { %s517_s15 = sld [smem:[#allocation6 + $0x8]]  ;;  %s351_s25 = sld [smem:[#allocation2 + $0x6]] }
  0x38   :  { %s524_s18 = sld [smem:[#allocation6 + $0x10]]  ;;  %s536_s26 = sld [smem:[#allocation2 + $0x7]] }
  0x39   :  { %v76_v3 = vstv %s75_s4  ;;  %s538_s2 = sld [smem:[#allocation4 + $0x1]]  ;;  %v79_v6 = vstv %s344_s10  ;;  %s554_s6 = sld [smem:[#allocation2 + $0x8]] }
  0x3a   :  { %v77_v5 = vmul.f32 %v76_v3, %v522_v0  ;;  %v83_v7 = vstv %s345_s11  ;;  %s546_s28 = sld [smem:[#allocation6 + $0x1]]  ;;  %v80_v8 = vmul.f32 %v529_v1, %v79_v6  ;;  %v87_v10 = vstv %s346_s12  ;;  %s558_s7 = sld [smem:[#allocation2 + $0xa]] }
  0x3b   :  { %s548_s29 = sld [smem:[#allocation6 + $0x9]]  ;;  %v84_v9 = vmul.f32 %v534_v2, %v83_v7  ;;  %v88_v12 = vmul.f32 %v543_v4, %v87_v10  ;;  %v104_v13 = vstv %s349_s19  ;;  %s561_s8 = sld [smem:[#allocation2 + $0xb]]  ;;  %v91_v21 = vstv %s513_s13 }
  0x3c   :  { %s552_s30 = sld [smem:[#allocation6 + $0x11]]  ;;  %v81_v11 = vadd.f32 %v80_v8, %v77_v5  ;;  %s563_s9 = sld [smem:[#allocation4 + $0x2]]  ;;  %v105_v14 = vmul.f32 %v104_v13, %v522_v0  ;;  %v107_v15 = vstv %s350_s24  ;;  %v95_v22 = vstv %s515_s14 }
  0x3d   :  { %s556_s0 = sld [smem:[#allocation2 + $0x9]]  ;;  %v111_v16 = vstv %s351_s25  ;;  %s566_s3 = sld [smem:[#allocation6 + $0x2]]  ;;  %v108_v18 = vmul.f32 %v529_v1, %v107_v15  ;;  %v98_v23 = vstv %s517_s15 }
  0x3e   :  { %v85_v17 = vadd.f32 %v84_v9, %v81_v11  ;;  %v112_v19 = vmul.f32 %v534_v2, %v111_v16  ;;  %v115_v20 = vstv %s536_s26  ;;  %s571_s4 = sld [smem:[#allocation6 + $0xa]]  ;;  %s573_s10 = sld [smem:[#allocation2 + $0xc]]  ;;  %v101_v24 = vstv %s524_s18 }
  0x3f   :  { %s579_s11 = sld [smem:[#allocation2 + $0xd]]  ;;  %s581_s12 = sld [smem:[#allocation2 + $0xe]]  ;;  %v109_v26 = vadd.f32 %v108_v18, %v105_v14  ;;  %v116_v27 = vmul.f32 %v543_v4, %v115_v20  ;;  %v135_v28 = vstv %s554_s6  ;;  %v119_v29 = vstv %s538_s2 }
  0x40   :  { %v89_v25 = vadd.f32 %v88_v12, %v85_v17  ;;  %s585_s16 = sld [smem:[#allocation2 + $0xf]]  ;;  %v136_v30 = vmul.f32 %v135_v28, %v522_v0  ;;  %v142_v32 = vstv %s558_s7  ;;  %s591_s13 = sld [smem:[#allocation6 + $0x12]]  ;;  %v123_v35 = vstv %s546_s28 }
  0x41   :  { %v113_v34 = vadd.f32 %v112_v19, %v109_v26  ;;  %s595_s14 = sld [smem:[#allocation4 + $0x3]]  ;;  %v127_v37 = vstv %s548_s29  ;;  %v143_v39 = vmul.f32 %v534_v2, %v142_v32  ;;  %v146_v40 = vstv %s561_s8  ;;  %s601_s15 = sld [smem:[#allocation2 + $0x10]] }
  0x42   :  { %v92_v33 = vadd.f32 %v91_v21, %v89_v25  ;;  %v131_v38 = vstv %s552_s30  ;;  %s603_s17 = sld [smem:[#allocation2 + $0x11]]  ;;  %v150_v44 = vstv %s563_s9  ;;  %v147_v45 = vmul.f32 %v543_v4, %v146_v40  ;;  %s610_s18 = sld [smem:[#allocation6 + $0x3]] }
  0x43   :  { %v138_v31 = vstv %s556_s0  ;;  %v117_v42 = vadd.f32 %v116_v27, %v113_v34  ;;  %s612_s19 = sld [smem:[#allocation2 + $0x12]]  ;;  %v154_v51 = vstv %s566_s3  ;;  %s616_s20 = sld [smem:[#allocation6 + $0xb]] }
  0x44   :  { %v139_v36 = vmul.f32 %v529_v1, %v138_v31  ;;  %v93_v41 = vmax.f32 %v92_v33, 0.0  ;;  %v166_v46 = vstv %s573_s10  ;;  %v158_v52 = vstv %s571_s4  ;;  %s618_s21 = sld [smem:[#allocation2 + $0x13]]  ;;  %s626_s23 = sld [smem:[#allocation4 + $0x4]] }
  0x45   :  { %v169_v47 = vstv %s579_s11  ;;  %v173_v48 = vstv %s581_s12  ;;  %v120_v50 = vadd.f32 %v119_v29, %v117_v42  ;;  %v167_v54 = vmul.f32 %v166_v46, %v522_v0  ;;  %s624_s22 = sld [smem:[#allocation6 + $0x13]]  ;;  %s630_s24 = sld [smem:[#allocation2 + $0x14]] }
  0x46   :  { %v140_v43 = vadd.f32 %v139_v36, %v136_v30  ;;  %v96_v49 = vmul.f32 %v95_v22, %v93_v41  ;;  %v170_v55 = vmul.f32 %v529_v1, %v169_v47  ;;  %v174_v56 = vmul.f32 %v534_v2, %v173_v48  ;;  %s633_s25 = sld [smem:[#allocation2 + $0x15]]  ;;  %s635_s26 = sld [smem:[#allocation2 + $0x16]] }
  0x47   :  { %v99_v57 = vmul.f32 %v98_v23, %v93_v41  ;;  %v102_v58 = vmul.f32 %v101_v24, %v93_v41  ;;  %v121_v59 = vmax.f32 %v120_v50, 0.0  ;;  %v177_v60 = vstv %s585_s16  ;;  %s640_s2 = sld [smem:[#allocation6 + $0x4]]  ;;  %s642_s1 = sld [smem:[#allocation2 + $0x17]] }
  0x48   :  { %v144_v53 = vadd.f32 %v143_v39, %v140_v43  ;;  %v162_v62 = vstv %s591_s13  ;;  %v171_v63 = vadd.f32 %v170_v55, %v167_v54  ;;  %v178_v3 = vmul.f32 %v543_v4, %v177_v60  ;;  %s646_s27 = sld [smem:[#allocation6 + $0xc]]  ;;  %s654_s29 = sld [smem:[#allocation2 + $0x18]] }
  0x49   :  { %v124_v5 = vmul.f32 %v123_v35, %v121_v59  ;;  %v128_v6 = vmul.f32 %v127_v37, %v121_v59  ;;  %v132_v7 = vmul.f32 %v131_v38, %v121_v59  ;;  %v181_v8 = vstv %s595_s14  ;;  %s648_s28 = sld [smem:[#allocation6 + $0x14]]  ;;  %s656_s30 = sld [smem:[#allocation2 + $0x19]] }
  0x4a   :  { %v148_v61 = vadd.f32 %v147_v45, %v144_v53  ;;  %v175_v10 = vadd.f32 %v174_v56, %v171_v63  ;;  %v197_v11 = vstv %s601_s15  ;;  %v200_v12 = vstv %s603_s17  ;;  %s661_s6 = sld [smem:[#allocation4 + $0x5]]  ;;  %s665_s7 = sld [smem:[#allocation2 + $0x1a]] }
  0x4b   :  { %v125_v13 = vadd.f32 %v124_v5, %v96_v49  ;;  %v129_v14 = vadd.f32 %v128_v6, %v99_v57  ;;  %v133_v15 = vadd.f32 %v132_v7, %v102_v58  ;;  %v198_v16 = vmul.f32 %v197_v11, %v522_v0  ;;  %s663_s0 = sld [smem:[#allocation6 + $0x5]]  ;;  %s667_s8 = sld [smem:[#allocation2 + $0x1b]] }
  0x4c   :  { %v151_v9 = vadd.f32 %v150_v44, %v148_v61  ;;  %v179_v18 = vadd.f32 %v178_v3, %v175_v10  ;;  %v201_v19 = vmul.f32 %v529_v1, %v200_v12  ;;  %v204_v20 = vstv %s612_s19  ;;  %s672_s9 = sld [smem:[#allocation6 + $0xd]]  ;;  %s680_s4 = sld [smem:[#allocation4 + $0x6]] }
  0x4d   :  { %v185_v21 = vstv %s610_s18  ;;  %v189_v22 = vstv %s616_s20  ;;  %v205_v23 = vmul.f32 %v534_v2, %v204_v20  ;;  %v208_v24 = vstv %s618_s21  ;;  %s678_s3 = sld [smem:[#allocation6 + $0x15]]  ;;  %s685_s10 = sld [smem:[#allocation2 + $0x1c]] }
  0x4e   :  { %v152_v17 = vmax.f32 %v151_v9, 0.0  ;;  %v182_v28 = vadd.f32 %v181_v8, %v179_v18  ;;  %v193_v29 = vstv %s624_s22  ;;  %v202_v30 = vadd.f32 %v201_v19, %v198_v16  ;;  %s687_s11 = sld [smem:[#allocation2 + $0x1d]]  ;;  %s690_s12 = sld [smem:[#allocation2 + $0x1e]] }
  0x4f   :  { %v209_v31 = vmul.f32 %v543_v4, %v208_v24  ;;  %v212_v32 = vstv %s626_s23  ;;  %v228_v38 = vstv %s630_s24  ;;  %v231_v39 = vstv %s633_s25  ;;  %s694_s16 = sld [smem:[#allocation2 + $0x1f]]  ;;  %s702_s13 = sld [smem:[#allocation6 + $0x6]] }
  0x50   :  { %v155_v25 = vmul.f32 %v154_v51, %v152_v17  ;;  %v159_v26 = vmul.f32 %v158_v52, %v152_v17  ;;  %v163_v27 = vmul.f32 %v162_v62, %v152_v17  ;;  %v183_v36 = vmax.f32 %v182_v28, 0.0  ;;  %s705_s14 = sld [smem:[#allocation6 + $0xe]]  ;;  %s711_s17 = sld [smem:[#allocation4 + $0x7]] }
  0x51   :  { %v206_v37 = vadd.f32 %v205_v23, %v202_v30  ;;  %v235_v40 = vstv %s635_s26  ;;  %v229_v44 = vmul.f32 %v228_v38, %v522_v0  ;;  %v232_v46 = vmul.f32 %v529_v1, %v231_v39  ;;  %s707_s15 = sld [smem:[#allocation6 + $0x16]]  ;;  %s720_s18 = sld [smem:[#allocation6 + $0x7]] }
  0x52   :  { %v156_v33 = vadd.f32 %v155_v25, %v125_v13  ;;  %v160_v34 = vadd.f32 %v159_v26, %v129_v14  ;;  %v164_v35 = vadd.f32 %v163_v27, %v133_v15  ;;  %v186_v41 = vmul.f32 %v185_v21, %v183_v36  ;;  %s724_s19 = sld [smem:[#allocation6 + $0xf]]  ;;  %s320_s21 = sld [smem:[#allocation7]] }
  0x53   :  { %v190_v42 = vmul.f32 %v189_v22, %v183_v36  ;;  %v194_v43 = vmul.f32 %v193_v29, %v183_v36  ;;  %v210_v45 = vadd.f32 %v209_v31, %v206_v37  ;;  %v236_v47 = vmul.f32 %v534_v2, %v235_v40  ;;  %s726_s20 = sld [smem:[#allocation6 + $0x17]]  ;;  %s405_s22 = sld [smem:[#allocation7 + $0x1]] }
  0x54   :  { %v239_v48 = vstv %s642_s1  ;;  %v216_v49 = vstv %s640_s2  ;;  %v220_v50 = vstv %s646_s27  ;;  %v224_v51 = vstv %s648_s28  ;;  %s407_s23 = sld [smem:[#allocation7 + $0x2]] }
  0x55   :  { %v187_v52 = vadd.f32 %v186_v41, %v156_v33  ;;  %v213_v53 = vadd.f32 %v212_v32, %v210_v45  ;;  %v233_v54 = vadd.f32 %v232_v46, %v229_v44  ;;  %v240_v55 = vmul.f32 %v543_v4, %v239_v48 }
  0x56   :  { %v191_v56 = vadd.f32 %v190_v42, %v160_v34  ;;  %v195_v57 = vadd.f32 %v194_v43, %v164_v35  ;;  %v259_v58 = vstv %s654_s29  ;;  %v262_v59 = vstv %s656_s30 }
  0x57   :  { %v214_v60 = vmax.f32 %v213_v53, 0.0  ;;  %v237_v61 = vadd.f32 %v236_v47, %v233_v54  ;;  %v260_v62 = vmul.f32 %v259_v58, %v522_v0  ;;  %v263_v63 = vmul.f32 %v529_v1, %v262_v59 }
  0x58   :  { %v243_v3 = vstv %s661_s6  ;;  %v247_v5 = vstv %s663_s0  ;;  %v266_v6 = vstv %s665_s7  ;;  %v270_v7 = vstv %s667_s8 }
  0x59   :  { %v217_v8 = vmul.f32 %v216_v49, %v214_v60  ;;  %v221_v9 = vmul.f32 %v220_v50, %v214_v60  ;;  %v241_v10 = vadd.f32 %v240_v55, %v237_v61  ;;  %v251_v11 = vstv %s672_s9 }
  0x5a   :  { %v225_v12 = vmul.f32 %v224_v51, %v214_v60  ;;  %v264_v13 = vadd.f32 %v263_v63, %v260_v62  ;;  %v267_v14 = vmul.f32 %v534_v2, %v266_v6  ;;  %v271_v15 = vmul.f32 %v543_v4, %v270_v7 }
  0x5b   :  { %v218_v16 = vadd.f32 %v217_v8, %v187_v52  ;;  %v244_v17 = vadd.f32 %v243_v3, %v241_v10  ;;  %v255_v18 = vstv %s678_s3  ;;  %v274_v19 = vstv %s680_s4 }
  0x5c   :  { %v222_v20 = vadd.f32 %v221_v9, %v191_v56  ;;  %v268_v21 = vadd.f32 %v267_v14, %v264_v13  ;;  %v290_v22 = vstv %s685_s10  ;;  %v293_v23 = vstv %s687_s11 }
  0x5d   :  { %v245_v24 = vmax.f32 %v244_v17, 0.0  ;;  %v291_v25 = vmul.f32 %v290_v22, %v522_v0  ;;  %v294_v26 = vmul.f32 %v529_v1, %v293_v23  ;;  %v297_v27 = vstv %s690_s12 }
  0x5e   :  { %v226_v28 = vadd.f32 %v225_v12, %v195_v57  ;;  %v272_v29 = vadd.f32 %v271_v15, %v268_v21  ;;  %v298_v30 = vmul.f32 %v534_v2, %v297_v27  ;;  %v301_v31 = vstv %s694_s16 }
  0x5f   :  { %v248_v32 = vmul.f32 %v247_v5, %v245_v24  ;;  %v252_v0 = vmul.f32 %v251_v11, %v245_v24  ;;  %v256_v33 = vmul.f32 %v255_v18, %v245_v24  ;;  %v295_v34 = vadd.f32 %v294_v26, %v291_v25 }
  0x60   :  { %v275_v1 = vadd.f32 %v274_v19, %v272_v29  ;;  %v302_v35 = vmul.f32 %v543_v4, %v301_v31  ;;  %v278_v36 = vstv %s702_s13  ;;  %v282_v37 = vstv %s705_s14 }
  0x61   :  { %v286_v38 = vstv %s707_s15  ;;  %v299_v39 = vadd.f32 %v298_v30, %v295_v34  ;;  %v305_v40 = vstv %s711_s17  ;;  %v249_v41 = vadd.f32 %v248_v32, %v218_v16 }
  0x62   :  { %v276_v2 = vmax.f32 %v275_v1, 0.0  ;;  %v253_v42 = vadd.f32 %v252_v0, %v222_v20  ;;  %v257_v43 = vadd.f32 %v256_v33, %v226_v28  ;;  %v309_v48 = vstv %s720_s18 }
  0x63   :  { %v303_v44 = vadd.f32 %v302_v35, %v299_v39  ;;  %v313_v49 = vstv %s724_s19  ;;  %v317_v50 = vstv %s726_s20  ;;  %v321_v58 = vstv %s320_s21 }
  0x64   :  { %v279_v45 = vmul.f32 %v278_v36, %v276_v2  ;;  %v283_v46 = vmul.f32 %v282_v37, %v276_v2  ;;  %v287_v47 = vmul.f32 %v286_v38, %v276_v2  ;;  %v325_v59 = vstv %s405_s22 }
  0x65   :  { %v306_v4 = vadd.f32 %v305_v40, %v303_v44  ;;  %v330_v60 = vstv %s407_s23 }
  0x66   :  { %v280_v51 = vadd.f32 %v279_v45, %v249_v41  ;;  %v284_v52 = vadd.f32 %v283_v46, %v253_v42  ;;  %v288_v53 = vadd.f32 %v287_v47, %v257_v43 }
  0x67   :  { %v307_v54 = vmax.f32 %v306_v4, 0.0 }
  0x69   :  { %v310_v55 = vmul.f32 %v309_v48, %v307_v54  ;;  %v314_v56 = vmul.f32 %v313_v49, %v307_v54  ;;  %v318_v57 = vmul.f32 %v317_v50, %v307_v54 }
  0x6b   :  { %v311_v61 = vadd.f32 %v310_v55, %v280_v51  ;;  %v315_v62 = vadd.f32 %v314_v56, %v284_v52  ;;  %v319_v63 = vadd.f32 %v318_v57, %v288_v53 }
  0x6d   :  { %v322_v3 = vadd.f32 %v321_v58, %v311_v61  ;;  %v326_v5 = vadd.f32 %v325_v59, %v315_v62  ;;  %v331_v6 = vadd.f32 %v330_v60, %v319_v63 }
  0x6f   :  { %323 = vst [vmem:[%s750_s5] sm:$0xff] %v322_v3  ;;  %406 = vst [vmem:[%s750_s5 + $0x8] sm:$0xff] %v326_v5 }
  0x70   :  { %408 = vst [vmem:[%s750_s5 + $0x10] sm:$0xff] %v331_v6 }
  0x71   :  { %338 = vsyncpa [#allocation3], 1 }
  0x72   :  { %339 = vsyncpa [#allocation5], 1 }
  0x73   :  { %340 = vsyncpa [#allocation8], 1 }

</bundles_post_ra>
